<compile_context>
chip_gen: v7x
topology: tpu7x:2x2x1
jax: 0.10.0
libtpu: 0.0.40
codegen_flags: <defaults>
</compile_context>

<pallas_src>
import functools

import jax
import jax.numpy as jnp
import numpy as np
from jax.experimental import pallas as pl
from jax.experimental.pallas import tpu as pltpu

LANE = 128      # lane width: class dim C is padded to this
SUBLANE = 8     # f32 sublane: batch dim is padded to a multiple of this


def two_layer_kernel(x_ref, w_ref, b_ref, scale_ref, shift_ref, o_ref):
    """Single-shot: one MXU matmul + fused f32 epilogue, everything resident in VMEM."""
    y = jnp.dot(x_ref[...], w_ref[...], preferred_element_type=jnp.float32)
    y = jnp.maximum(y + b_ref[...], 0.0)                       # Linear bias + ReLU
    o_ref[...] = (y * scale_ref[...] + shift_ref[...]).astype(o_ref.dtype)


def prepare_two_layer_params(w, b, mu, gamma, aff_w, aff_b):
    """One-time (init-time) constant prep.

    w: [F, C] (transpose of PyTorch's [C, F]), others: [C].
    Returns lane-dense, already-cast parameters to pass to two_layer_forward.
    """
    F, C = w.shape
    Cp = ((C + LANE - 1) // LANE) * LANE

    # Fold Constraint_Norm1d + Constraint_Affine1d into a single scale/shift pair:
    #   ((relu(xW+b) - mu) * gamma) * aff_w + aff_b == relu(xW+b) * scale + shift
    scale = (gamma * aff_w).astype(jnp.float32)
    shift = (aff_b - mu * gamma * aff_w).astype(jnp.float32)

    # Pad to lane-dense C (padded columns: W=0, b=0, scale=1, shift=0 -> padded outputs are 0).
    w_pad = jnp.zeros((F, Cp), jnp.float32).at[:, :C].set(w.astype(jnp.float32))
    b_pad = jnp.zeros((1, Cp), jnp.float32).at[0, :C].set(b.astype(jnp.float32))
    s_pad = jnp.ones((1, Cp), jnp.float32).at[0, :C].set(scale)
    h_pad = jnp.zeros((1, Cp), jnp.float32).at[0, :C].set(shift)

    params = {
        "w_bf": jax.device_put(w_pad.astype(jnp.bfloat16)),    # bf16 MXU input, padded once
        "b": jax.device_put(b_pad),
        "scale": jax.device_put(s_pad),
        "shift": jax.device_put(h_pad),
        "num_classes": C,
    }
    return params


@functools.partial(jax.jit, static_argnames=("num_classes",))
def _two_layer_forward_jit(x, w_bf, b_pad, s_pad, h_pad, *, num_classes):
    bsz = x.shape[0]
    x2d = x.reshape(bsz, -1)
    F = x2d.shape[1]
    Cp = w_bf.shape[1]

    # Pad batch to a full sublane multiple -> unmasked vector stores on the output.
    Bp = ((bsz + SUBLANE - 1) // SUBLANE) * SUBLANE
    x_bf = jnp.zeros((Bp, F), jnp.bfloat16).at[:bsz, :].set(x2d.astype(jnp.bfloat16))

    vmem_spec = pl.BlockSpec(memory_space=pltpu.MemorySpace.VMEM)

    out = pl.pallas_call(
        two_layer_kernel,
        out_shape=jax.ShapeDtypeStruct((Bp, Cp), jnp.float32),
        in_specs=[vmem_spec] * 5,
        out_specs=vmem_spec,
    )(x_bf, w_bf, b_pad, s_pad, h_pad)

    return out[:bsz, :num_classes]


def two_layer_forward(x, params):
    """x: [B, ...] (flattened inside). params: output of prepare_two_layer_params."""
    return _two_layer_forward_jit(
        x, params["w_bf"], params["b"], params["scale"], params["shift"],
        num_classes=params["num_classes"],
    )


def reference_forward(x, w, b, mu, gamma, aff_w, aff_b):
    """Same dtype choices as the kernel (bf16 matmul inputs, f32 accumulate/epilogue)."""
    bsz = x.shape[0]
    x2d = x.reshape(bsz, -1)
    y = jnp.dot(x2d.astype(jnp.bfloat16), w.astype(jnp.bfloat16),
                preferred_element_type=jnp.float32)
    y = jnp.maximum(y + b, 0.0)
    y = (y - mu) * gamma
    y = y * aff_w + aff_b
    return y


if __name__ == "__main__":
    key = jax.random.PRNGKey(0)
    k_x, k_w, k_b = jax.random.split(key, 3)

    B, C_in, H, W_sp = 2, 3, 32, 32          # flattens to input_dim = 3072
    input_dim = C_in * H * W_sp
    num_classes = 10

    x = jax.random.normal(k_x, (B, C_in, H, W_sp), dtype=jnp.float32)

    # Deterministic Linear init (PyTorch-style uniform bounds), stored as [F, C].
    bound = 1.0 / np.sqrt(input_dim)
    w = jax.random.uniform(k_w, (input_dim, num_classes),
                           minval=-bound, maxval=bound, dtype=jnp.float32)
    b = jax.random.uniform(k_b, (num_classes,),
                           minval=-bound, maxval=bound, dtype=jnp.float32)

    # Constraint_Norm1d params: mu=0, gamma=1. Constraint_Affine1d: weight=1, bias=0.
    mu = jnp.zeros((num_classes,), jnp.float32)
    gamma = jnp.ones((num_classes,), jnp.float32)
    aff_w = jnp.ones((num_classes,), jnp.float32)
    aff_b = jnp.zeros((num_classes,), jnp.float32)

    # One-time constant prep ("model init"), then a jitted forward call.
    params = prepare_two_layer_params(w, b, mu, gamma, aff_w, aff_b)

    out = two_layer_forward(x, params)
    out = jax.block_until_ready(out)

    ref = reference_forward(x, w, b, mu, gamma, aff_w, aff_b)
    np.testing.assert_allclose(np.asarray(out), np.asarray(ref),
                               rtol=1e-3, atol=1e-3)
    print("KERNEL_OK")
</pallas_src>

<mosaic_0001>
module attributes {stable_mosaic.version = 11 : i64} {
  func.func @two_layer_kernel(%arg0: memref<8x3072xbf16, #tpu.memory_space<vmem>>, %arg1: memref<3072x128xbf16, #tpu.memory_space<vmem>>, %arg2: memref<1x128xf32, #tpu.memory_space<vmem>>, %arg3: memref<1x128xf32, #tpu.memory_space<vmem>>, %arg4: memref<1x128xf32, #tpu.memory_space<vmem>>, %arg5: memref<8x128xf32, #tpu.memory_space<vmem>>) attributes {dimension_semantics = [], scalar_prefetch = 0 : i64, scratch_operands = 0 : i64, tpu.core_type = #tpu.core_type<tc>} {
    %c0 = arith.constant 0 : index
    %c0_0 = arith.constant 0 : index
    %0 = vector.load %arg0[%c0, %c0_0] : memref<8x3072xbf16, #tpu.memory_space<vmem>>, vector<8x3072xbf16>
    %c0_1 = arith.constant 0 : index
    %c0_2 = arith.constant 0 : index
    %1 = vector.load %arg1[%c0_1, %c0_2] : memref<3072x128xbf16, #tpu.memory_space<vmem>>, vector<3072x128xbf16>
    %cst = arith.constant dense<0.000000e+00> : vector<8x128xf32>
    %2 = tpu.matmul %0, %1, %cst {dimension_numbers = #tpu.dot_dimension_numbers<[1], [0], [0], [1], [0, 0, 1, 1], [], []>} : vector<8x3072xbf16>, vector<3072x128xbf16>, vector<8x128xf32> -> vector<8x128xf32>
    %c0_3 = arith.constant 0 : index
    %c0_4 = arith.constant 0 : index
    %3 = vector.load %arg2[%c0_3, %c0_4] : memref<1x128xf32, #tpu.memory_space<vmem>>, vector<1x128xf32>
    %4 = vector.broadcast %3 : vector<1x128xf32> to vector<8x128xf32>
    %5 = arith.addf %2, %4 : vector<8x128xf32>
    %cst_5 = arith.constant 0.000000e+00 : f32
    %6 = vector.broadcast %cst_5 : f32 to vector<8x128xf32>
    %7 = arith.maximumf %5, %6 : vector<8x128xf32>
    %c0_6 = arith.constant 0 : index
    %c0_7 = arith.constant 0 : index
    %8 = vector.load %arg3[%c0_6, %c0_7] : memref<1x128xf32, #tpu.memory_space<vmem>>, vector<1x128xf32>
    %9 = vector.broadcast %8 : vector<1x128xf32> to vector<8x128xf32>
    %10 = arith.mulf %7, %9 : vector<8x128xf32>
    %c0_8 = arith.constant 0 : index
    %c0_9 = arith.constant 0 : index
    %11 = vector.load %arg4[%c0_8, %c0_9] : memref<1x128xf32, #tpu.memory_space<vmem>>, vector<1x128xf32>
    %12 = vector.broadcast %11 : vector<1x128xf32> to vector<8x128xf32>
    %13 = arith.addf %10, %12 : vector<8x128xf32>
    %c0_10 = arith.constant 0 : index
    %c0_11 = arith.constant 0 : index
    %14 = vector.load %arg5[%c0_10, %c0_11] : memref<8x128xf32, #tpu.memory_space<vmem>>, vector<8x128xf32>
    tpu.vector_store %arg5[%c0_10, %c0_11], %13 {strides = array<i32>} : memref<8x128xf32, #tpu.memory_space<vmem>>, vector<8x128xf32>,
    return
  }
}

</mosaic_0001>

<bundles_post_ra>
// kernel: _two_layer_forward_jit.1
= control target key start
LH: loop header
LB: loop body
LE: loop exit
PB: predicated region body
PF: predicated region fallthrough
CT: control target
= control target key end

     0   :  { %10 = vsyncpa [#allocation3], 0  ;;  %s2903_s18 = smov [#allocation2]   ;;  %s2996_s0 = inlined_call_operand.vmem [shape: bf16[8,3072], index: 0, kind: input, shape index: {}]   ;;  %s2997_s1 = inlined_call_operand.hbm [shape: bf16[3072,128], index: 1, kind: input, shape index: {}]   ;;  %s2998_s2 = inlined_call_operand.vmem [shape: f32[1,128], index: 2, kind: input, shape index: {}]   ;;  %s2999_s3 = inlined_call_operand.vmem [shape: f32[1,128], index: 3, kind: input, shape index: {}]   ;;  %s3000_s4 = inlined_call_operand.vmem [shape: f32[1,128], index: 4, kind: input, shape index: {}]   ;;  %s3001_s5 = inlined_call_operand.vmem [shape: f32[8,128], index: 5, kind: output, shape index: {}]  }
   0x1   :  { %s18_s19 = sshll.u32 %s2903_s18, 4  ;;  %s2879_s22 = scalar_lea.hbm %s2997_s1, 24576  ;;  %s19_s19 = int_to_ptr.vmem [resolvable:$true] %s18_s19 }
   0x2   :  { %p2880_p0 = scmp.ne.s32.totalorder %s2997_s1, %s2879_s22  ;;  %p2883_p1 = scmp.lt.u32.totalorder %s2879_s22, %s2997_s1 }
   0x4   :  { %p2885_p2 = pnand %p2883_p1, %p2880_p0 }
   0x6   :  { %2888 = shalt.err (!%p2885_p2)
}
   0x7   :  { %s2889_s27 = scalar_lea.vmem %s19_s19, 24576  ;;  %p2894_p4 = scmp.lt.s32.totalorder %s19_s19, %s19_s19 }
   0x8   :  { %p2890_p3 = scmp.ne.s32.totalorder %s19_s19, %s2889_s27  ;;  %p2895_p5 = scmp.lt.s32.totalorder %s2889_s27, %s2889_s27 }
   0xa   :  { %p2896_p6 = por %p2895_p5, %p2894_p4 }
   0xc   :  { %p2897_p7 = pnand %p2896_p6, %p2890_p3 }
   0xe   :  { %2900 = shalt.err (!%p2897_p7)
}
   0xf   :  { %s2904_s28 = smov 64   ;;  %s2905_s29 = smov 4  }
  0x10   :  { %24 = dma.hbm_to_vmem [thread:$0]  %s2997_s1, 24576, %s19_s19, [#allocation3], %s2904_s28, %s2904_s28, %s2905_s29  }
  0x11   :  { %2901 = dma.done.wait [#allocation3], 24576  }
  0x12   :  { %2902 = vsyncadd [#allocation3], 4294942720  ;;  %v2663_v0 = vld [vmem:[#allocation2 + $0x40] sm:$0xff]   ;;  %v2667_v4 = vld [vmem:[#allocation2 + $0x48] sm:$0xff]  }
  0x13   :  { %v2664_v1 = vld [vmem:[#allocation2 + $0xc0] sm:$0xff]   ;;  %2396 = vmatprep.subr.bf16.mxu0 %v2663_v0  ;;  %v2668_v5 = vld [vmem:[#allocation2 + $0xc8] sm:$0xff]   ;;  %v2671_v8 = vld [vmem:[#allocation2 + $0x50] sm:$0xff]  }
  0x14   :  { %v2665_v2 = vld [vmem:[#allocation2] sm:$0xff]   ;;  %2418 = vmatprep.subr.bf16.mxu1 %v2664_v1  ;;  %v2669_v6 = vld [vmem:[#allocation2 + $0x8] sm:$0xff]   ;;  %v2672_v9 = vld [vmem:[#allocation2 + $0xd0] sm:$0xff]  }
  0x15   :  { %v2666_v3 = vld [vmem:[#allocation2 + $0x80] sm:$0xff]   ;;  %2397 = vmatpush3.bf16.msra.mxu0 %v2665_v2  ;;  %v2670_v7 = vld [vmem:[#allocation2 + $0x88] sm:$0xff]   ;;  %v2673_v10 = vld [vmem:[#allocation2 + $0x10] sm:$0xff]  }
  0x16   :  { %2419 = vmatpush3.bf16.msra.mxu1 %v2666_v3  ;;  %2398 = vmatprep.subr.bf16.mxu0 %v2667_v4  ;;  %v2674_v11 = vld [vmem:[#allocation2 + $0x90] sm:$0xff]   ;;  %v2675_v12 = vld [vmem:[#allocation2 + $0x58] sm:$0xff]   ;;  %v2679_v16 = vld [vmem:[#allocation2 + $0x60] sm:$0xff]  }
  0x17   :  { %2420 = vmatprep.subr.bf16.mxu1 %v2668_v5  ;;  %v2676_v13 = vld [vmem:[#allocation2 + $0xd8] sm:$0xff]   ;;  %v2680_v17 = vld [vmem:[#allocation2 + $0xe0] sm:$0xff]   ;;  %v2683_v20 = vld [vmem:[#allocation2 + $0x68] sm:$0xff]  }
  0x18   :  { %v2677_v14 = vld [vmem:[#allocation2 + $0x18] sm:$0xff]   ;;  %v2681_v18 = vld [vmem:[#allocation2 + $0x20] sm:$0xff]   ;;  %v2684_v21 = vld [vmem:[#allocation2 + $0xe8] sm:$0xff]  }
  0x19   :  { %2399 = vmatpush3.bf16.msra.mxu0 %v2669_v6  ;;  %v2678_v15 = vld [vmem:[#allocation2 + $0x98] sm:$0xff]   ;;  %v2682_v19 = vld [vmem:[#allocation2 + $0xa0] sm:$0xff]   ;;  %v2685_v22 = vld [vmem:[#allocation2 + $0x28] sm:$0xff]  }
  0x1a   :  { %2421 = vmatpush3.bf16.msra.mxu1 %v2670_v7  ;;  %2400 = vmatprep.subr.bf16.mxu0 %v2671_v8  ;;  %v2686_v23 = vld [vmem:[#allocation2 + $0xa8] sm:$0xff]   ;;  %v2687_v24 = vld [vmem:[#allocation2 + $0x70] sm:$0xff]   ;;  %v2691_v28 = vld [vmem:[#allocation2 + $0x78] sm:$0xff]  }
  0x1b   :  { %2422 = vmatprep.subr.bf16.mxu1 %v2672_v9  ;;  %v2688_v25 = vld [vmem:[#allocation2 + $0xf0] sm:$0xff]   ;;  %v2692_v29 = vld [vmem:[#allocation2 + $0xf8] sm:$0xff]   ;;  %v35_v32 = vld [vmem:[%s2996_s0] sm:$0xff] }
  0x1c   :  { %v2689_v26 = vld [vmem:[#allocation2 + $0x30] sm:$0xff]   ;;  %v2693_v30 = vld [vmem:[#allocation2 + $0x38] sm:$0xff]   ;;  %v36_v33 = vld [vmem:[%s2996_s0 + $0x8] sm:$0xff]  ;;  %v2178_v34 = vcombine.low %v35_v32, %v35_v32  ;;  %v2179_v35 = vcombine.high %v35_v32, %v35_v32 }
  0x1d   :  { %2401 = vmatpush3.bf16.msra.mxu0 %v2673_v10  ;;  %v2690_v27 = vld [vmem:[#allocation2 + $0xb0] sm:$0xff]   ;;  %v2694_v31 = vld [vmem:[#allocation2 + $0xb8] sm:$0xff]   ;;  %v2180_v36 = vcombine.low %v36_v33, %v36_v33  ;;  %v2181_v37 = vcombine.high %v36_v33, %v36_v33  ;;  %v2699_v38 = vld [vmem:[#allocation2 + $0x140] sm:$0xff]  }
  0x1e   :  { %2423 = vmatpush3.bf16.msra.mxu1 %v2674_v11  ;;  %2402 = vmatprep.subr.bf16.mxu0 %v2675_v12  ;;  %v2700_v39 = vld [vmem:[#allocation2 + $0x1c0] sm:$0xff]   ;;  %v2703_v42 = vld [vmem:[#allocation2 + $0x148] sm:$0xff]   ;;  %v2707_v46 = vld [vmem:[#allocation2 + $0x150] sm:$0xff]  }
  0x1f   :  { %2424 = vmatprep.subr.bf16.mxu1 %v2676_v13  ;;  %1706 = vmatprep.mubr.bf16.mxu0 %v2179_v35  ;;  %v2701_v40 = vld [vmem:[#allocation2 + $0x100] sm:$0xff]   ;;  %v2704_v43 = vld [vmem:[#allocation2 + $0x1c8] sm:$0xff]   ;;  %v2708_v47 = vld [vmem:[#allocation2 + $0x1d0] sm:$0xff]  }
  0x20   :  { %1746 = vmatprep.mubr.bf16.mxu1 %v2181_v37  ;;  %v2702_v41 = vld [vmem:[#allocation2 + $0x180] sm:$0xff]   ;;  %v2705_v44 = vld [vmem:[#allocation2 + $0x108] sm:$0xff]   ;;  %v2709_v48 = vld [vmem:[#allocation2 + $0x110] sm:$0xff]  }
  0x21   :  { %2403 = vmatpush3.bf16.msra.mxu0 %v2677_v14  ;;  %v2706_v45 = vld [vmem:[#allocation2 + $0x188] sm:$0xff]   ;;  %v2710_v49 = vld [vmem:[#allocation2 + $0x190] sm:$0xff]   ;;  %v2711_v50 = vld [vmem:[#allocation2 + $0x158] sm:$0xff]  }
  0x22   :  { %2425 = vmatpush3.bf16.msra.mxu1 %v2678_v15  ;;  %2404 = vmatprep.subr.bf16.mxu0 %v2679_v16  ;;  %v2712_v51 = vld [vmem:[#allocation2 + $0x1d8] sm:$0xff]   ;;  %v2715_v54 = vld [vmem:[#allocation2 + $0x160] sm:$0xff]   ;;  %v2719_v58 = vld [vmem:[#allocation2 + $0x168] sm:$0xff]  }
  0x23   :  { %2426 = vmatprep.subr.bf16.mxu1 %v2680_v17  ;;  %v2713_v52 = vld [vmem:[#allocation2 + $0x118] sm:$0xff]   ;;  %v2716_v55 = vld [vmem:[#allocation2 + $0x1e0] sm:$0xff]   ;;  %v2720_v59 = vld [vmem:[#allocation2 + $0x1e8] sm:$0xff]  }
  0x24   :  { %v2714_v53 = vld [vmem:[#allocation2 + $0x198] sm:$0xff]   ;;  %v2717_v56 = vld [vmem:[#allocation2 + $0x120] sm:$0xff]   ;;  %v2721_v60 = vld [vmem:[#allocation2 + $0x128] sm:$0xff]  }
  0x25   :  { %2405 = vmatpush3.bf16.msra.mxu0 %v2681_v18  ;;  %v2718_v57 = vld [vmem:[#allocation2 + $0x1a0] sm:$0xff]   ;;  %v2722_v61 = vld [vmem:[#allocation2 + $0x1a8] sm:$0xff]   ;;  %v2723_v62 = vld [vmem:[#allocation2 + $0x170] sm:$0xff]  }
  0x26   :  { %2427 = vmatpush3.bf16.msra.mxu1 %v2682_v19  ;;  %2406 = vmatprep.subr.bf16.mxu0 %v2683_v20  ;;  %v2724_v63 = vld [vmem:[#allocation2 + $0x1f0] sm:$0xff]   ;;  %v2727_v2 = vld [vmem:[#allocation2 + $0x178] sm:$0xff]   ;;  %v2735_v12 = vld [vmem:[#allocation2 + $0x240] sm:$0xff]  }
  0x27   :  { %2428 = vmatprep.subr.bf16.mxu1 %v2684_v21  ;;  %v2725_v0 = vld [vmem:[#allocation2 + $0x130] sm:$0xff]   ;;  %v2728_v3 = vld [vmem:[#allocation2 + $0x1f8] sm:$0xff]   ;;  %v2736_v13 = vld [vmem:[#allocation2 + $0x2c0] sm:$0xff]  }
  0x28   :  { %v2726_v1 = vld [vmem:[#allocation2 + $0x1b0] sm:$0xff]   ;;  %v2729_v4 = vld [vmem:[#allocation2 + $0x138] sm:$0xff]   ;;  %v2737_v14 = vld [vmem:[#allocation2 + $0x200] sm:$0xff]  }
  0x29   :  { %2407 = vmatpush3.bf16.msra.mxu0 %v2685_v22  ;;  %v2730_v5 = vld [vmem:[#allocation2 + $0x1b8] sm:$0xff]   ;;  %v37_v6 = vld [vmem:[%s2996_s0 + $0x10] sm:$0xff]  ;;  %v2738_v15 = vld [vmem:[#allocation2 + $0x280] sm:$0xff]  }
  0x2a   :  { %2429 = vmatpush3.bf16.msra.mxu1 %v2686_v23  ;;  %2408 = vmatprep.subr.bf16.mxu0 %v2687_v24  ;;  %v2182_v7 = vcombine.low %v37_v6, %v37_v6  ;;  %v2183_v8 = vcombine.high %v37_v6, %v37_v6  ;;  %v38_v9 = vld [vmem:[%s2996_s0 + $0x18] sm:$0xff]  ;;  %v2739_v16 = vld [vmem:[#allocation2 + $0x248] sm:$0xff]   ;;  %v2743_v20 = vld [vmem:[#allocation2 + $0x250] sm:$0xff]  }
  0x2b   :  { %2430 = vmatprep.subr.bf16.mxu1 %v2688_v25  ;;  %v2184_v10 = vcombine.low %v38_v9, %v38_v9  ;;  %v2185_v11 = vcombine.high %v38_v9, %v38_v9  ;;  %v2740_v17 = vld [vmem:[#allocation2 + $0x2c8] sm:$0xff]   ;;  %v2744_v21 = vld [vmem:[#allocation2 + $0x2d0] sm:$0xff]   ;;  %v2747_v24 = vld [vmem:[#allocation2 + $0x258] sm:$0xff]  }
  0x2c   :  { %v2741_v18 = vld [vmem:[#allocation2 + $0x208] sm:$0xff]   ;;  %v2745_v22 = vld [vmem:[#allocation2 + $0x210] sm:$0xff]   ;;  %v2748_v25 = vld [vmem:[#allocation2 + $0x2d8] sm:$0xff]  }
  0x2d   :  { %2409 = vmatpush3.bf16.msra.mxu0 %v2689_v26  ;;  %v2742_v19 = vld [vmem:[#allocation2 + $0x288] sm:$0xff]   ;;  %v2746_v23 = vld [vmem:[#allocation2 + $0x290] sm:$0xff]   ;;  %v2749_v26 = vld [vmem:[#allocation2 + $0x218] sm:$0xff]  }
  0x2e   :  { %2431 = vmatpush3.bf16.msra.mxu1 %v2690_v27  ;;  %2410 = vmatprep.subr.bf16.mxu0 %v2691_v28  ;;  %v2750_v27 = vld [vmem:[#allocation2 + $0x298] sm:$0xff]   ;;  %v2751_v28 = vld [vmem:[#allocation2 + $0x260] sm:$0xff]   ;;  %v2755_v32 = vld [vmem:[#allocation2 + $0x268] sm:$0xff]  }
  0x2f   :  { %2432 = vmatprep.subr.bf16.mxu1 %v2692_v29  ;;  %v2752_v29 = vld [vmem:[#allocation2 + $0x2e0] sm:$0xff]   ;;  %v2756_v33 = vld [vmem:[#allocation2 + $0x2e8] sm:$0xff]   ;;  %v2760_v37 = vld [vmem:[#allocation2 + $0x2f0] sm:$0xff]  }
  0x30   :  { %v2758_v35 = vld [vmem:[#allocation2 + $0x2a8] sm:$0xff]  }
  0x31   :  { %2411 = vmatpush3.bf16.msra.mxu0 %v2693_v30  ;;  %v2753_v30 = vld [vmem:[#allocation2 + $0x220] sm:$0xff]   ;;  %v2791_v6 = vld [vmem:[#allocation2 + $0x368] sm:$0xff]  }
  0x32   :  { %2433 = vmatpush3.bf16.msra.mxu1 %v2694_v31  ;;  %2440 = vmatprep.subr.bf16.mxu0 %v2699_v38  ;;  %v2754_v31 = vld [vmem:[#allocation2 + $0x2a0] sm:$0xff]   ;;  %v2761_v38 = vld [vmem:[#allocation2 + $0x230] sm:$0xff]   ;;  %v2794_v9 = vld [vmem:[#allocation2 + $0x3a8] sm:$0xff]  }
  0x33   :  { %2462 = vmatprep.subr.bf16.mxu1 %v2700_v39  ;;  %v2762_v39 = vld [vmem:[#allocation2 + $0x2b0] sm:$0xff]  }
  0x34   :  { %1707 = vmatmul.mubr.bf16.vlgmr.msra.gmra.mrb[0].mxu0 %v2178_v34  ;;  %v2757_v34 = vld [vmem:[#allocation2 + $0x228] sm:$0xff]  }
  0x35   :  { %1747 = vmatmul.mubr.bf16.vlgmr.msra.gmra.mrb[0].mxu1 %v2180_v36  ;;  %2441 = vmatpush3.bf16.msra.mxu0 %v2701_v40  ;;  %v2759_v36 = vld [vmem:[#allocation2 + $0x270] sm:$0xff]   ;;  %v2763_v40 = vld [vmem:[#allocation2 + $0x278] sm:$0xff]  }
  0x36   :  { %2463 = vmatpush3.bf16.msra.mxu1 %v2702_v41  ;;  %2442 = vmatprep.subr.bf16.mxu0 %v2703_v42  ;;  %v2764_v41 = vld [vmem:[#allocation2 + $0x2f8] sm:$0xff]  }
  0x37   :  { %2464 = vmatprep.subr.bf16.mxu1 %v2704_v43  ;;  %1786 = vmatprep.mubr.bf16.mxu0 %v2183_v8  ;;  %v2765_v42 = vld [vmem:[#allocation2 + $0x238] sm:$0xff]   ;;  %v2793_v8 = vld [vmem:[#allocation2 + $0x328] sm:$0xff]  }
  0x38   :  { %1826 = vmatprep.mubr.bf16.mxu1 %v2185_v11  ;;  %v2766_v43 = vld [vmem:[#allocation2 + $0x2b8] sm:$0xff]   ;;  %v2796_v11 = vld [vmem:[#allocation2 + $0x3f0] sm:$0xff]  }
  0x39   :  { %2443 = vmatpush3.bf16.msra.mxu0 %v2705_v44  ;;  %v39_v44 = vld [vmem:[%s2996_s0 + $0x20] sm:$0xff] }
  0x3a   :  { %2465 = vmatpush3.bf16.msra.mxu1 %v2706_v45  ;;  %2444 = vmatprep.subr.bf16.mxu0 %v2707_v46  ;;  %v40_v45 = vld [vmem:[%s2996_s0 + $0x28] sm:$0xff]  ;;  %v2186_v46 = vcombine.low %v39_v44, %v39_v44 }
  0x3b   :  { %2466 = vmatprep.subr.bf16.mxu1 %v2708_v47  ;;  %v2187_v47 = vcombine.high %v39_v44, %v39_v44  ;;  %v2827_v44 = vld [vmem:[#allocation2 + $0x468] sm:$0xff]  }
  0x3d   :  { %2445 = vmatpush3.bf16.msra.mxu0 %v2709_v48  ;;  %v2188_v48 = vcombine.low %v40_v45, %v40_v45 }
  0x3e   :  { %2467 = vmatpush3.bf16.msra.mxu1 %v2710_v49  ;;  %2446 = vmatprep.subr.bf16.mxu0 %v2711_v50  ;;  %v2189_v49 = vcombine.high %v40_v45, %v40_v45  ;;  %v2771_v50 = vld [vmem:[#allocation2 + $0x340] sm:$0xff]   ;;  %v2828_v45 = vld [vmem:[#allocation2 + $0x4e8] sm:$0xff]  }
  0x3f   :  { %2468 = vmatprep.subr.bf16.mxu1 %v2712_v51  ;;  %v2772_v51 = vld [vmem:[#allocation2 + $0x3c0] sm:$0xff]  }
  0x41   :  { %2447 = vmatpush3.bf16.msra.mxu0 %v2713_v52  ;;  %v2773_v52 = vld [vmem:[#allocation2 + $0x300] sm:$0xff]  }
  0x42   :  { %2469 = vmatpush3.bf16.msra.mxu1 %v2714_v53  ;;  %2448 = vmatprep.subr.bf16.mxu0 %v2715_v54  ;;  %v2774_v53 = vld [vmem:[#allocation2 + $0x380] sm:$0xff]   ;;  %v2775_v54 = vld [vmem:[#allocation2 + $0x348] sm:$0xff]  }
  0x43   :  { %2470 = vmatprep.subr.bf16.mxu1 %v2716_v55  ;;  %v2776_v55 = vld [vmem:[#allocation2 + $0x3c8] sm:$0xff]  }
  0x45   :  { %2449 = vmatpush3.bf16.msra.mxu0 %v2717_v56  ;;  %v2777_v56 = vld [vmem:[#allocation2 + $0x308] sm:$0xff]  }
  0x46   :  { %2471 = vmatpush3.bf16.msra.mxu1 %v2718_v57  ;;  %2450 = vmatprep.subr.bf16.mxu0 %v2719_v58  ;;  %v2778_v57 = vld [vmem:[#allocation2 + $0x388] sm:$0xff]   ;;  %v2779_v58 = vld [vmem:[#allocation2 + $0x350] sm:$0xff]  }
  0x47   :  { %2472 = vmatprep.subr.bf16.mxu1 %v2720_v59  ;;  %v2780_v59 = vld [vmem:[#allocation2 + $0x3d0] sm:$0xff]  }
  0x49   :  { %2451 = vmatpush3.bf16.msra.mxu0 %v2721_v60  ;;  %v2781_v60 = vld [vmem:[#allocation2 + $0x310] sm:$0xff]  }
  0x4a   :  { %2473 = vmatpush3.bf16.msra.mxu1 %v2722_v61  ;;  %2452 = vmatprep.subr.bf16.mxu0 %v2723_v62  ;;  %v2782_v61 = vld [vmem:[#allocation2 + $0x390] sm:$0xff]   ;;  %v2783_v62 = vld [vmem:[#allocation2 + $0x358] sm:$0xff]  }
  0x4b   :  { %2474 = vmatprep.subr.bf16.mxu1 %v2724_v63  ;;  %v2784_v63 = vld [vmem:[#allocation2 + $0x3d8] sm:$0xff]  }
  0x4d   :  { %2453 = vmatpush3.bf16.msra.mxu0 %v2725_v0  ;;  %v2785_v0 = vld [vmem:[#allocation2 + $0x318] sm:$0xff]  }
  0x4e   :  { %2475 = vmatpush3.bf16.msra.mxu1 %v2726_v1  ;;  %2454 = vmatprep.subr.bf16.mxu0 %v2727_v2  ;;  %v2786_v1 = vld [vmem:[#allocation2 + $0x398] sm:$0xff]   ;;  %v2787_v2 = vld [vmem:[#allocation2 + $0x360] sm:$0xff]  }
  0x4f   :  { %2476 = vmatprep.subr.bf16.mxu1 %v2728_v3  ;;  %v2788_v3 = vld [vmem:[#allocation2 + $0x3e0] sm:$0xff]  }
  0x51   :  { %2455 = vmatpush3.bf16.msra.mxu0 %v2729_v4  ;;  %v2789_v4 = vld [vmem:[#allocation2 + $0x320] sm:$0xff]  }
  0x52   :  { %2477 = vmatpush3.bf16.msra.mxu1 %v2730_v5  ;;  %2484 = vmatprep.subr.bf16.mxu0 %v2735_v12  ;;  %v2790_v5 = vld [vmem:[#allocation2 + $0x3a0] sm:$0xff]   ;;  %v2797_v12 = vld [vmem:[#allocation2 + $0x330] sm:$0xff]  }
  0x53   :  { %2506 = vmatprep.subr.bf16.mxu1 %v2736_v13  ;;  %v2798_v13 = vld [vmem:[#allocation2 + $0x3b0] sm:$0xff]  }
  0x54   :  { %1787 = vmatmul.mubr.bf16.vlgmr.msra.gmra.mrb[4].mxu0 %v2182_v7  ;;  %v2792_v7 = vld [vmem:[#allocation2 + $0x3e8] sm:$0xff]  }
  0x55   :  { %1827 = vmatmul.mubr.bf16.vlgmr.msra.gmra.mrb[4].mxu1 %v2184_v10  ;;  %2485 = vmatpush3.bf16.msra.mxu0 %v2737_v14  ;;  %v2795_v10 = vld [vmem:[#allocation2 + $0x370] sm:$0xff]   ;;  %v2799_v14 = vld [vmem:[#allocation2 + $0x378] sm:$0xff]  }
  0x56   :  { %2507 = vmatpush3.bf16.msra.mxu1 %v2738_v15  ;;  %2486 = vmatprep.subr.bf16.mxu0 %v2739_v16  ;;  %v2800_v15 = vld [vmem:[#allocation2 + $0x3f8] sm:$0xff]  }
  0x57   :  { %2508 = vmatprep.subr.bf16.mxu1 %v2740_v17  ;;  %1866 = vmatprep.mubr.bf16.mxu0 %v2187_v47  ;;  %v2801_v16 = vld [vmem:[#allocation2 + $0x338] sm:$0xff]   ;;  %v2830_v47 = vld [vmem:[#allocation2 + $0x4a8] sm:$0xff]  }
  0x58   :  { %1906 = vmatprep.mubr.bf16.mxu1 %v2189_v49  ;;  %v2802_v17 = vld [vmem:[#allocation2 + $0x3b8] sm:$0xff]   ;;  %v2832_v49 = vld [vmem:[#allocation2 + $0x4f0] sm:$0xff]  }
  0x59   :  { %2487 = vmatpush3.bf16.msra.mxu0 %v2741_v18  ;;  %v41_v18 = vld [vmem:[%s2996_s0 + $0x30] sm:$0xff] }
  0x5a   :  { %2509 = vmatpush3.bf16.msra.mxu1 %v2742_v19  ;;  %2488 = vmatprep.subr.bf16.mxu0 %v2743_v20  ;;  %v42_v19 = vld [vmem:[%s2996_s0 + $0x38] sm:$0xff]  ;;  %v2190_v20 = vcombine.low %v41_v18, %v41_v18 }
  0x5b   :  { %2510 = vmatprep.subr.bf16.mxu1 %v2744_v21  ;;  %v2191_v21 = vcombine.high %v41_v18, %v41_v18  ;;  %v2863_v18 = vld [vmem:[#allocation2 + $0x568] sm:$0xff]  }
  0x5d   :  { %2489 = vmatpush3.bf16.msra.mxu0 %v2745_v22  ;;  %v2192_v22 = vcombine.low %v42_v19, %v42_v19 }
  0x5e   :  { %2511 = vmatpush3.bf16.msra.mxu1 %v2746_v23  ;;  %2490 = vmatprep.subr.bf16.mxu0 %v2747_v24  ;;  %v2807_v23 = vld [vmem:[#allocation2 + $0x440] sm:$0xff]   ;;  %v2193_v24 = vcombine.high %v42_v19, %v42_v19  ;;  %v2864_v19 = vld [vmem:[#allocation2 + $0x5e8] sm:$0xff]  }
  0x5f   :  { %2512 = vmatprep.subr.bf16.mxu1 %v2748_v25  ;;  %v2808_v25 = vld [vmem:[#allocation2 + $0x4c0] sm:$0xff]  }
  0x61   :  { %2491 = vmatpush3.bf16.msra.mxu0 %v2749_v26  ;;  %v2809_v26 = vld [vmem:[#allocation2 + $0x400] sm:$0xff]  }
  0x62   :  { %2513 = vmatpush3.bf16.msra.mxu1 %v2750_v27  ;;  %2492 = vmatprep.subr.bf16.mxu0 %v2751_v28  ;;  %v2810_v27 = vld [vmem:[#allocation2 + $0x480] sm:$0xff]   ;;  %v2811_v28 = vld [vmem:[#allocation2 + $0x448] sm:$0xff]  }
  0x63   :  { %2514 = vmatprep.subr.bf16.mxu1 %v2752_v29  ;;  %v2812_v29 = vld [vmem:[#allocation2 + $0x4c8] sm:$0xff]  }
  0x65   :  { %2493 = vmatpush3.bf16.msra.mxu0 %v2753_v30  ;;  %v2813_v30 = vld [vmem:[#allocation2 + $0x408] sm:$0xff]  }
  0x66   :  { %2515 = vmatpush3.bf16.msra.mxu1 %v2754_v31  ;;  %2494 = vmatprep.subr.bf16.mxu0 %v2755_v32  ;;  %v2814_v31 = vld [vmem:[#allocation2 + $0x488] sm:$0xff]   ;;  %v2815_v32 = vld [vmem:[#allocation2 + $0x450] sm:$0xff]  }
  0x67   :  { %2516 = vmatprep.subr.bf16.mxu1 %v2756_v33  ;;  %v2816_v33 = vld [vmem:[#allocation2 + $0x4d0] sm:$0xff]  }
  0x69   :  { %2495 = vmatpush3.bf16.msra.mxu0 %v2757_v34  ;;  %v2817_v34 = vld [vmem:[#allocation2 + $0x410] sm:$0xff]  }
  0x6a   :  { %2517 = vmatpush3.bf16.msra.mxu1 %v2758_v35  ;;  %2496 = vmatprep.subr.bf16.mxu0 %v2759_v36  ;;  %v2818_v35 = vld [vmem:[#allocation2 + $0x490] sm:$0xff]   ;;  %v2819_v36 = vld [vmem:[#allocation2 + $0x458] sm:$0xff]  }
  0x6b   :  { %2518 = vmatprep.subr.bf16.mxu1 %v2760_v37  ;;  %v2820_v37 = vld [vmem:[#allocation2 + $0x4d8] sm:$0xff]  }
  0x6d   :  { %2497 = vmatpush3.bf16.msra.mxu0 %v2761_v38  ;;  %v2821_v38 = vld [vmem:[#allocation2 + $0x418] sm:$0xff]  }
  0x6e   :  { %2519 = vmatpush3.bf16.msra.mxu1 %v2762_v39  ;;  %2498 = vmatprep.subr.bf16.mxu0 %v2763_v40  ;;  %v2822_v39 = vld [vmem:[#allocation2 + $0x498] sm:$0xff]   ;;  %v2823_v40 = vld [vmem:[#allocation2 + $0x460] sm:$0xff]  }
  0x6f   :  { %2520 = vmatprep.subr.bf16.mxu1 %v2764_v41  ;;  %v2824_v41 = vld [vmem:[#allocation2 + $0x4e0] sm:$0xff]  }
  0x71   :  { %2499 = vmatpush3.bf16.msra.mxu0 %v2765_v42  ;;  %v2825_v42 = vld [vmem:[#allocation2 + $0x420] sm:$0xff]  }
  0x72   :  { %2521 = vmatpush3.bf16.msra.mxu1 %v2766_v43  ;;  %2528 = vmatprep.subr.bf16.mxu0 %v2771_v50  ;;  %v2826_v43 = vld [vmem:[#allocation2 + $0x4a0] sm:$0xff]   ;;  %v2833_v50 = vld [vmem:[#allocation2 + $0x430] sm:$0xff]  }
  0x73   :  { %2550 = vmatprep.subr.bf16.mxu1 %v2772_v51  ;;  %v2834_v51 = vld [vmem:[#allocation2 + $0x4b0] sm:$0xff]  }
  0x74   :  { %1867 = vmatmul.mubr.bf16.vlgmr.msra.gmra.mrb[8].mxu0 %v2186_v46  ;;  %v2829_v46 = vld [vmem:[#allocation2 + $0x428] sm:$0xff]  }
  0x75   :  { %1907 = vmatmul.mubr.bf16.vlgmr.msra.gmra.mrb[8].mxu1 %v2188_v48  ;;  %2529 = vmatpush3.bf16.msra.mxu0 %v2773_v52  ;;  %v2831_v48 = vld [vmem:[#allocation2 + $0x470] sm:$0xff]   ;;  %v2835_v52 = vld [vmem:[#allocation2 + $0x478] sm:$0xff]  }
  0x76   :  { %2551 = vmatpush3.bf16.msra.mxu1 %v2774_v53  ;;  %2530 = vmatprep.subr.bf16.mxu0 %v2775_v54  ;;  %v2836_v53 = vld [vmem:[#allocation2 + $0x4f8] sm:$0xff]  }
  0x77   :  { %2552 = vmatprep.subr.bf16.mxu1 %v2776_v55  ;;  %1946 = vmatprep.mubr.bf16.mxu0 %v2191_v21  ;;  %v2837_v54 = vld [vmem:[#allocation2 + $0x438] sm:$0xff]   ;;  %v2866_v21 = vld [vmem:[#allocation2 + $0x5a8] sm:$0xff]  }
  0x78   :  { %1986 = vmatprep.mubr.bf16.mxu1 %v2193_v24  ;;  %v2838_v55 = vld [vmem:[#allocation2 + $0x4b8] sm:$0xff]   ;;  %v2869_v24 = vld [vmem:[#allocation2 + $0x530] sm:$0xff]  }
  0x79   :  { %2531 = vmatpush3.bf16.msra.mxu0 %v2777_v56  ;;  %v43_v56 = vld [vmem:[%s2996_s0 + $0x40] sm:$0xff] }
  0x7a   :  { %2553 = vmatpush3.bf16.msra.mxu1 %v2778_v57  ;;  %2532 = vmatprep.subr.bf16.mxu0 %v2779_v58  ;;  %v2194_v57 = vcombine.low %v43_v56, %v43_v56  ;;  %v2195_v58 = vcombine.high %v43_v56, %v43_v56 }
  0x7b   :  { %2554 = vmatprep.subr.bf16.mxu1 %v2780_v59  ;;  %v44_v59 = vld [vmem:[%s2996_s0 + $0x48] sm:$0xff] }
  0x7d   :  { %2533 = vmatpush3.bf16.msra.mxu0 %v2781_v60  ;;  %v2196_v60 = vcombine.low %v44_v59, %v44_v59 }
  0x7e   :  { %2555 = vmatpush3.bf16.msra.mxu1 %v2782_v61  ;;  %2534 = vmatprep.subr.bf16.mxu0 %v2783_v62  ;;  %v2197_v61 = vcombine.high %v44_v59, %v44_v59  ;;  %v2843_v62 = vld [vmem:[#allocation2 + $0x540] sm:$0xff]  }
  0x7f   :  { %2556 = vmatprep.subr.bf16.mxu1 %v2784_v63  ;;  %v2844_v63 = vld [vmem:[#allocation2 + $0x5c0] sm:$0xff]  }
  0x81   :  { %2535 = vmatpush3.bf16.msra.mxu0 %v2785_v0  ;;  %v2845_v0 = vld [vmem:[#allocation2 + $0x500] sm:$0xff]  }
  0x82   :  { %2557 = vmatpush3.bf16.msra.mxu1 %v2786_v1  ;;  %2536 = vmatprep.subr.bf16.mxu0 %v2787_v2  ;;  %v2846_v1 = vld [vmem:[#allocation2 + $0x580] sm:$0xff]   ;;  %v2847_v2 = vld [vmem:[#allocation2 + $0x548] sm:$0xff]  }
  0x83   :  { %2558 = vmatprep.subr.bf16.mxu1 %v2788_v3  ;;  %v2848_v3 = vld [vmem:[#allocation2 + $0x5c8] sm:$0xff]  }
  0x85   :  { %2537 = vmatpush3.bf16.msra.mxu0 %v2789_v4  ;;  %v2849_v4 = vld [vmem:[#allocation2 + $0x508] sm:$0xff]  }
  0x86   :  { %2559 = vmatpush3.bf16.msra.mxu1 %v2790_v5  ;;  %2538 = vmatprep.subr.bf16.mxu0 %v2791_v6  ;;  %v2850_v5 = vld [vmem:[#allocation2 + $0x588] sm:$0xff]   ;;  %v2851_v6 = vld [vmem:[#allocation2 + $0x550] sm:$0xff]  }
  0x87   :  { %2560 = vmatprep.subr.bf16.mxu1 %v2792_v7  ;;  %v2852_v7 = vld [vmem:[#allocation2 + $0x5d0] sm:$0xff]  }
  0x89   :  { %2539 = vmatpush3.bf16.msra.mxu0 %v2793_v8  ;;  %v2853_v8 = vld [vmem:[#allocation2 + $0x510] sm:$0xff]  }
  0x8a   :  { %2561 = vmatpush3.bf16.msra.mxu1 %v2794_v9  ;;  %2540 = vmatprep.subr.bf16.mxu0 %v2795_v10  ;;  %v2854_v9 = vld [vmem:[#allocation2 + $0x590] sm:$0xff]   ;;  %v2855_v10 = vld [vmem:[#allocation2 + $0x558] sm:$0xff]  }
  0x8b   :  { %2562 = vmatprep.subr.bf16.mxu1 %v2796_v11  ;;  %v2856_v11 = vld [vmem:[#allocation2 + $0x5d8] sm:$0xff]  }
  0x8d   :  { %2541 = vmatpush3.bf16.msra.mxu0 %v2797_v12  ;;  %v2857_v12 = vld [vmem:[#allocation2 + $0x518] sm:$0xff]  }
  0x8e   :  { %2563 = vmatpush3.bf16.msra.mxu1 %v2798_v13  ;;  %2542 = vmatprep.subr.bf16.mxu0 %v2799_v14  ;;  %v2858_v13 = vld [vmem:[#allocation2 + $0x598] sm:$0xff]   ;;  %v2859_v14 = vld [vmem:[#allocation2 + $0x560] sm:$0xff]  }
  0x8f   :  { %2564 = vmatprep.subr.bf16.mxu1 %v2800_v15  ;;  %v2860_v15 = vld [vmem:[#allocation2 + $0x5e0] sm:$0xff]  }
  0x91   :  { %2543 = vmatpush3.bf16.msra.mxu0 %v2801_v16  ;;  %v2861_v16 = vld [vmem:[#allocation2 + $0x520] sm:$0xff]  }
  0x92   :  { %2565 = vmatpush3.bf16.msra.mxu1 %v2802_v17  ;;  %2572 = vmatprep.subr.bf16.mxu0 %v2807_v23  ;;  %v2862_v17 = vld [vmem:[#allocation2 + $0x5a0] sm:$0xff]   ;;  %v2868_v23 = vld [vmem:[#allocation2 + $0x5f0] sm:$0xff]  }
  0x93   :  { %2594 = vmatprep.subr.bf16.mxu1 %v2808_v25  ;;  %v2870_v25 = vld [vmem:[#allocation2 + $0x5b0] sm:$0xff]  }
  0x94   :  { %1947 = vmatmul.mubr.bf16.vlgmr.msra.gmra.mrb[12].mxu0 %v2190_v20  ;;  %v2865_v20 = vld [vmem:[#allocation2 + $0x528] sm:$0xff]  }
  0x95   :  { %1987 = vmatmul.mubr.bf16.vlgmr.msra.gmra.mrb[12].mxu1 %v2192_v22  ;;  %2573 = vmatpush3.bf16.msra.mxu0 %v2809_v26  ;;  %v2867_v22 = vld [vmem:[#allocation2 + $0x570] sm:$0xff]   ;;  %v2871_v26 = vld [vmem:[#allocation2 + $0x578] sm:$0xff]  }
  0x96   :  { %2595 = vmatpush3.bf16.msra.mxu1 %v2810_v27  ;;  %2574 = vmatprep.subr.bf16.mxu0 %v2811_v28  ;;  %v2872_v27 = vld [vmem:[#allocation2 + $0x5f8] sm:$0xff]  }
  0x97   :  { %2596 = vmatprep.subr.bf16.mxu1 %v2812_v29  ;;  %2026 = vmatprep.mubr.bf16.mxu0 %v2195_v58  ;;  %v2873_v28 = vld [vmem:[#allocation2 + $0x538] sm:$0xff]  }
  0x98   :  { %2066 = vmatprep.mubr.bf16.mxu1 %v2197_v61  ;;  %v2874_v29 = vld [vmem:[#allocation2 + $0x5b8] sm:$0xff]  }
  0x99   :  { %2575 = vmatpush3.bf16.msra.mxu0 %v2813_v30  ;;  %v45_v30 = vld [vmem:[%s2996_s0 + $0x50] sm:$0xff] }
  0x9a   :  { %2597 = vmatpush3.bf16.msra.mxu1 %v2814_v31  ;;  %2576 = vmatprep.subr.bf16.mxu0 %v2815_v32  ;;  %v46_v31 = vld [vmem:[%s2996_s0 + $0x58] sm:$0xff]  ;;  %v2198_v32 = vcombine.low %v45_v30, %v45_v30 }
  0x9b   :  { %2598 = vmatprep.subr.bf16.mxu1 %v2816_v33  ;;  %v2199_v33 = vcombine.high %v45_v30, %v45_v30 }
  0x9d   :  { %2577 = vmatpush3.bf16.msra.mxu0 %v2817_v34  ;;  %v2200_v34 = vcombine.low %v46_v31, %v46_v31 }
  0x9e   :  { %2599 = vmatpush3.bf16.msra.mxu1 %v2818_v35  ;;  %2578 = vmatprep.subr.bf16.mxu0 %v2819_v36  ;;  %v2201_v35 = vcombine.high %v46_v31, %v46_v31 }
  0x9f   :  { %2600 = vmatprep.subr.bf16.mxu1 %v2820_v37 }
  0xa1   :  { %2579 = vmatpush3.bf16.msra.mxu0 %v2821_v38  ;;  %v2177_v38 = vld [vmem:[%s2998_s2] ss:$0 sm:$0xff] }
  0xa2   :  { %2601 = vmatpush3.bf16.msra.mxu1 %v2822_v39  ;;  %2580 = vmatprep.subr.bf16.mxu0 %v2823_v40 }
  0xa3   :  { %2602 = vmatprep.subr.bf16.mxu1 %v2824_v41 }
  0xa5   :  { %2581 = vmatpush3.bf16.msra.mxu0 %v2825_v42 }
  0xa6   :  { %2603 = vmatpush3.bf16.msra.mxu1 %v2826_v43  ;;  %2582 = vmatprep.subr.bf16.mxu0 %v2827_v44 }
  0xa7   :  { %2604 = vmatprep.subr.bf16.mxu1 %v2828_v45 }
  0xa9   :  { %2583 = vmatpush3.bf16.msra.mxu0 %v2829_v46 }
  0xaa   :  { %2605 = vmatpush3.bf16.msra.mxu1 %v2830_v47  ;;  %2584 = vmatprep.subr.bf16.mxu0 %v2831_v48 }
  0xab   :  { %2606 = vmatprep.subr.bf16.mxu1 %v2832_v49 }
  0xad   :  { %2585 = vmatpush3.bf16.msra.mxu0 %v2833_v50 }
  0xae   :  { %2607 = vmatpush3.bf16.msra.mxu1 %v2834_v51  ;;  %2586 = vmatprep.subr.bf16.mxu0 %v2835_v52 }
  0xaf   :  { %2608 = vmatprep.subr.bf16.mxu1 %v2836_v53 }
  0xb1   :  { %2587 = vmatpush3.bf16.msra.mxu0 %v2837_v54 }
  0xb2   :  { %2609 = vmatpush3.bf16.msra.mxu1 %v2838_v55  ;;  %2616 = vmatprep.subr.bf16.mxu0 %v2843_v62 }
  0xb3   :  { %2638 = vmatprep.subr.bf16.mxu1 %v2844_v63 }
  0xb4   :  { %2027 = vmatmul.mubr.bf16.vlgmr.msra.gmra.mrb[16].mxu0 %v2194_v57 }
  0xb5   :  { %2067 = vmatmul.mubr.bf16.vlgmr.msra.gmra.mrb[16].mxu1 %v2196_v60  ;;  %2617 = vmatpush3.bf16.msra.mxu0 %v2845_v0 }
  0xb6   :  { %2639 = vmatpush3.bf16.msra.mxu1 %v2846_v1  ;;  %2618 = vmatprep.subr.bf16.mxu0 %v2847_v2 }
  0xb7   :  { %2640 = vmatprep.subr.bf16.mxu1 %v2848_v3  ;;  %2106 = vmatprep.mubr.bf16.mxu0 %v2199_v33 }
  0xb8   :  { %2146 = vmatprep.mubr.bf16.mxu1 %v2201_v35 }
  0xb9   :  { %2619 = vmatpush3.bf16.msra.mxu0 %v2849_v4 }
  0xba   :  { %2641 = vmatpush3.bf16.msra.mxu1 %v2850_v5  ;;  %2620 = vmatprep.subr.bf16.mxu0 %v2851_v6 }
  0xbb   :  { %2642 = vmatprep.subr.bf16.mxu1 %v2852_v7 }
  0xbd   :  { %2621 = vmatpush3.bf16.msra.mxu0 %v2853_v8 }
  0xbe   :  { %2643 = vmatpush3.bf16.msra.mxu1 %v2854_v9  ;;  %2622 = vmatprep.subr.bf16.mxu0 %v2855_v10 }
  0xbf   :  { %2644 = vmatprep.subr.bf16.mxu1 %v2856_v11 }
  0xc1   :  { %2623 = vmatpush3.bf16.msra.mxu0 %v2857_v12 }
  0xc2   :  { %2645 = vmatpush3.bf16.msra.mxu1 %v2858_v13  ;;  %2624 = vmatprep.subr.bf16.mxu0 %v2859_v14 }
  0xc3   :  { %2646 = vmatprep.subr.bf16.mxu1 %v2860_v15 }
  0xc5   :  { %2625 = vmatpush3.bf16.msra.mxu0 %v2861_v16 }
  0xc6   :  { %2647 = vmatpush3.bf16.msra.mxu1 %v2862_v17  ;;  %2626 = vmatprep.subr.bf16.mxu0 %v2863_v18 }
  0xc7   :  { %2648 = vmatprep.subr.bf16.mxu1 %v2864_v19 }
  0xc9   :  { %2627 = vmatpush3.bf16.msra.mxu0 %v2865_v20 }
  0xca   :  { %2649 = vmatpush3.bf16.msra.mxu1 %v2866_v21  ;;  %2628 = vmatprep.subr.bf16.mxu0 %v2867_v22 }
  0xcb   :  { %2650 = vmatprep.subr.bf16.mxu1 %v2868_v23 }
  0xcd   :  { %2629 = vmatpush3.bf16.msra.mxu0 %v2869_v24 }
  0xce   :  { %2651 = vmatpush3.bf16.msra.mxu1 %v2870_v25  ;;  %2630 = vmatprep.subr.bf16.mxu0 %v2871_v26 }
  0xcf   :  { %2652 = vmatprep.subr.bf16.mxu1 %v2872_v27 }
  0xd1   :  { %2631 = vmatpush3.bf16.msra.mxu0 %v2873_v28 }
  0xd2   :  { %2653 = vmatpush3.bf16.msra.mxu1 %v2874_v29 }
  0xd4   :  { %2107 = vmatmul.mubr.bf16.vlgmr.msra.gmra.mrb[20].mxu0 %v2198_v32 }
  0xd5   :  { %2147 = vmatmul.mubr.bf16.vlgmr.msra.gmra.mrb[20].mxu1 %v2200_v34 }
 0x107   :  { %v2412_v36 = vpop.f32.mrb[0].mxu0 }
 0x108   :  { %v2434_v37 = vpop.f32.mrb[0].mxu1  ;;  %v2413_v39 = vpop.f32.mrb[1].mxu0 }
 0x109   :  { %v2435_v40 = vpop.f32.mrb[1].mxu1  ;;  %v2414_v41 = vadd.f32 %v2413_v39, %v2412_v36  ;;  %v2415_v43 = vpop.f32.mrb[2].mxu0 }
 0x10a   :  { %v2436_v42 = vadd.f32 %v2435_v40, %v2434_v37  ;;  %v2437_v44 = vpop.f32.mrb[2].mxu1  ;;  %v2416_v45 = vpop.f32.mrb[3].mxu0 }
 0x10b   :  { %v2438_v46 = vpop.f32.mrb[3].mxu1  ;;  %v1709_v47 = vadd.f32 %v2414_v41, %v2177_v38  ;;  %v2394_v45 = vld [vmem:[%s2999_s3] ss:$0 sm:$0xff] }
 0x10d   :  { %v1749_v48 = vadd.f32 %v2436_v42, %v1709_v47  ;;  %v2395_v47 = vld [vmem:[%s3000_s4] ss:$0 sm:$0xff] }
 0x127   :  { %v2456_v49 = vpop.f32.mrb[4].mxu0 }
 0x128   :  { %v2478_v50 = vpop.f32.mrb[4].mxu1  ;;  %v2457_v51 = vpop.f32.mrb[5].mxu0 }
 0x129   :  { %v2479_v52 = vpop.f32.mrb[5].mxu1  ;;  %v2458_v53 = vadd.f32 %v2457_v51, %v2456_v49  ;;  %v2459_v55 = vpop.f32.mrb[6].mxu0 }
 0x12a   :  { %v2480_v54 = vadd.f32 %v2479_v52, %v2478_v50  ;;  %v2481_v56 = vpop.f32.mrb[6].mxu1  ;;  %v2460_v57 = vpop.f32.mrb[7].mxu0 }
 0x12b   :  { %v2482_v58 = vpop.f32.mrb[7].mxu1  ;;  %v1789_v59 = vadd.f32 %v2458_v53, %v1749_v48 }
 0x12d   :  { %v1829_v60 = vadd.f32 %v2480_v54, %v1789_v59 }
 0x147   :  { %v2500_v61 = vpop.f32.mrb[8].mxu0 }
 0x148   :  { %v2522_v62 = vpop.f32.mrb[8].mxu1  ;;  %v2501_v63 = vpop.f32.mrb[9].mxu0 }
 0x149   :  { %v2502_v0 = vadd.f32 %v2501_v63, %v2500_v61  ;;  %v2523_v1 = vpop.f32.mrb[9].mxu1  ;;  %v2503_v2 = vpop.f32.mrb[10].mxu0 }
 0x14a   :  { %v2524_v3 = vadd.f32 %v2523_v1, %v2522_v62  ;;  %v2525_v4 = vpop.f32.mrb[10].mxu1  ;;  %v2504_v5 = vpop.f32.mrb[11].mxu0 }
 0x14b   :  { %v1869_v6 = vadd.f32 %v2502_v0, %v1829_v60  ;;  %v2526_v7 = vpop.f32.mrb[11].mxu1 }
 0x14d   :  { %v1909_v8 = vadd.f32 %v2524_v3, %v1869_v6 }
 0x167   :  { %v2544_v9 = vpop.f32.mrb[12].mxu0 }
 0x168   :  { %v2566_v10 = vpop.f32.mrb[12].mxu1  ;;  %v2545_v11 = vpop.f32.mrb[13].mxu0 }
 0x169   :  { %v2546_v12 = vadd.f32 %v2545_v11, %v2544_v9  ;;  %v2567_v13 = vpop.f32.mrb[13].mxu1  ;;  %v2547_v14 = vpop.f32.mrb[14].mxu0 }
 0x16a   :  { %v2568_v15 = vadd.f32 %v2567_v13, %v2566_v10  ;;  %v2569_v16 = vpop.f32.mrb[14].mxu1  ;;  %v2548_v17 = vpop.f32.mrb[15].mxu0 }
 0x16b   :  { %v1949_v18 = vadd.f32 %v2546_v12, %v1909_v8  ;;  %v2570_v19 = vpop.f32.mrb[15].mxu1 }
 0x16d   :  { %v1989_v20 = vadd.f32 %v2568_v15, %v1949_v18 }
 0x187   :  { %v2588_v21 = vpop.f32.mrb[16].mxu0 }
 0x188   :  { %v2610_v22 = vpop.f32.mrb[16].mxu1  ;;  %v2589_v23 = vpop.f32.mrb[17].mxu0 }
 0x189   :  { %v2611_v24 = vpop.f32.mrb[17].mxu1  ;;  %v2590_v25 = vadd.f32 %v2589_v23, %v2588_v21  ;;  %v2591_v27 = vpop.f32.mrb[18].mxu0 }
 0x18a   :  { %v2612_v26 = vadd.f32 %v2611_v24, %v2610_v22  ;;  %v2613_v28 = vpop.f32.mrb[18].mxu1  ;;  %v2592_v29 = vpop.f32.mrb[19].mxu0 }
 0x18b   :  { %v2614_v30 = vpop.f32.mrb[19].mxu1  ;;  %v2029_v31 = vadd.f32 %v2590_v25, %v1989_v20 }
 0x18d   :  { %v2069_v32 = vadd.f32 %v2612_v26, %v2029_v31 }
 0x1a7   :  { %v2632_v33 = vpop.f32.mrb[20].mxu0 }
 0x1a8   :  { %v2654_v34 = vpop.f32.mrb[20].mxu1  ;;  %v2633_v35 = vpop.f32.mrb[21].mxu0 }
 0x1a9   :  { %v2634_v36 = vadd.f32 %v2633_v35, %v2632_v33  ;;  %v2655_v37 = vpop.f32.mrb[21].mxu1  ;;  %v2635_v38 = vpop.f32.mrb[22].mxu0 }
 0x1aa   :  { %v2656_v39 = vadd.f32 %v2655_v37, %v2654_v34  ;;  %v2657_v40 = vpop.f32.mrb[22].mxu1  ;;  %v2636_v41 = vpop.f32.mrb[23].mxu0 }
 0x1ab   :  { %v2109_v42 = vadd.f32 %v2634_v36, %v2069_v32  ;;  %v2658_v43 = vpop.f32.mrb[23].mxu1 }
 0x1ad   :  { %v2149_v44 = vadd.f32 %v2656_v39, %v2109_v42 }
 0x1af   :  { %v2154_v46 = vmax.f32 %v2149_v44, 0.0 }
 0x1b1   :  { %v2162_v48 = vmul.f32 %v2394_v45, %v2154_v46 }
 0x1b3   :  { %v2170_v49 = vadd.f32 %v2395_v47, %v2162_v48 }
 0x1b5   :  { %2171 = vst [vmem:[%s3001_s5] sm:$0xff] %v2170_v49 }
 0x1b6   :  { %2176 = vsyncpa [#allocation3], 1 }

</bundles_post_ra>
